<compile_context>
chip_gen: v7x
topology: tpu7x:2x2x1
jax: 0.10.0
libtpu: 0.0.40
codegen_flags: <defaults>
</compile_context>

<pallas_src>
import math

import jax
import jax.numpy as jnp
from jax.experimental import pallas as pl
from jax.experimental.pallas import tpu as pltpu


def _moog_cell_kernel(m_ref, b_ref, g_ref,        # SMEM constants
                      u_n_ref, u_n1_ref, x_n1_ref,  # VMEM (1,Bp)/(1,Bp)/(4,Bp)
                      y_ref, x_ref):                # VMEM (1,Bp)/(4,Bp)
    x_n1 = x_n1_ref[...]                          # (4, Bp)
    u_sum = u_n_ref[...] + u_n1_ref[...]          # (1, Bp)

    # x_n[i] = sum_j M[i,j] * x_n1[j] + b[i] * u_sum   -- unrolled VPU FMAs,
    # scalars broadcast from SMEM (no MXU, batch lane-parallel on the VPU).
    rows = []
    for i in range(4):
        acc = b_ref[i] * u_sum                    # (1, Bp)
        for j in range(4):
            acc = acc + m_ref[i, j] * x_n1[j:j + 1, :]
        rows.append(acc)

    x_n = jnp.concatenate(rows, axis=0)           # (4, Bp)
    x_ref[...] = x_n
    # C = [0, 0, 0, gain]  =>  y = gain * x_n[3]
    y_ref[...] = g_ref[0] * rows[3]               # (1, Bp)


class MoogVCFRFModelCellPallas:
    """JAX/Pallas port of MoogVCFRFModelCell."""

    def __init__(self, r, f, gain, sample_rate):
        # buffers (from __init__ args)
        self.r = jnp.float32(r)
        self.f = jnp.float32(f)
        self.sample_rate = jnp.float32(sample_rate)
        # learnable parameters, deterministic init as in the PyTorch module
        self.gf = jnp.float32(1.5936)
        self.gr = jnp.float32(1.0462)
        self.gain = jnp.float32(2.9421)
        self.k = jnp.float32(1.0 / sample_rate)
        self.I = jnp.eye(4, dtype=jnp.float32)
        self.update_matrices()

    def update_matrices(self):
        # glue / parameter setup in plain JAX (tiny 4x4 algebra incl. inverse)
        w = jnp.float32(2.0 * math.pi) * self.gf * self.f
        z = jnp.float32(0.0)
        A = jnp.array(
            [[-w, z, z, -4.0 * w * self.gr * self.r],
             [w, -w, z, z],
             [z, w, -w, z],
             [z, z, w, -w]], dtype=jnp.float32)                 # (4, 4)
        B = jnp.array([[w], [z], [z], [z]], dtype=jnp.float32)  # (4, 1)

        k_A_div_two = self.k * A / 2.0
        inv = jnp.linalg.inv(self.I - k_A_div_two)              # (4, 4)
        P = self.I + k_A_div_two                                # (4, 4)
        kB2 = self.k * B / 2.0                                  # (4, 1)

        # --- folded constants used by the kernel (computed once) ---
        self.M_fold = (inv @ P).astype(jnp.float32)             # (4, 4)
        self.b_fold = (inv @ kB2).reshape(4).astype(jnp.float32)  # (4,)
        self.gain_arr = jnp.array([self.gain], dtype=jnp.float32)  # (1,)

        # kept for the reference check (matches the torch math exactly)
        self.inv_I_minus_kAdt = inv
        self.I_plus_kAdt = P
        self.k_mul_b_div_two = kB2
        self.C = jnp.array([[z, z, z, self.gain]], dtype=jnp.float32)

    def forward(self, u_n, x_n1, u_n1):
        """u_n, u_n1: (B, 1, 1) float32; x_n1: (B, 4, 1) float32.

        Returns (y_n (B,1,1), x_n (B,4,1), u_n), matching the torch module.
        """
        batch = u_n.shape[0]
        # lane-dense layout: batch on the lane axis, padded to multiple of 128
        b_pad = max(128, ((batch + 127) // 128) * 128)
        pad = b_pad - batch

        u_n_t = u_n.reshape(batch, 1).astype(jnp.float32).T     # (1, B)
        u_n1_t = u_n1.reshape(batch, 1).astype(jnp.float32).T   # (1, B)
        x_n1_t = x_n1.reshape(batch, 4).astype(jnp.float32).T   # (4, B)
        if pad:
            u_n_t = jnp.pad(u_n_t, ((0, 0), (0, pad)))
            u_n1_t = jnp.pad(u_n1_t, ((0, 0), (0, pad)))
            x_n1_t = jnp.pad(x_n1_t, ((0, 0), (0, pad)))

        smem_spec = pl.BlockSpec(memory_space=pltpu.MemorySpace.SMEM)
        vmem_spec = pl.BlockSpec(memory_space=pltpu.MemorySpace.VMEM)

        y_t, x_t = pl.pallas_call(
            _moog_cell_kernel,
            out_shape=(
                jax.ShapeDtypeStruct((1, b_pad), jnp.float32),
                jax.ShapeDtypeStruct((4, b_pad), jnp.float32),
            ),
            in_specs=[smem_spec, smem_spec, smem_spec,
                      vmem_spec, vmem_spec, vmem_spec],
            out_specs=(vmem_spec, vmem_spec),
        )(self.M_fold, self.b_fold, self.gain_arr, u_n_t, u_n1_t, x_n1_t)

        x_n = x_t[:, :batch].T.reshape(batch, 4, 1)
        y_n = y_t[:, :batch].T.reshape(batch, 1, 1)
        return y_n, x_n, u_n


def _reference_forward(cell, u_n, x_n1, u_n1):
    """Plain-JAX replica of the PyTorch per-batch loop (for verification)."""
    batch = u_n.shape[0]
    x_out = []
    y_out = []
    for i in range(batch):
        xi = cell.inv_I_minus_kAdt @ (
            cell.I_plus_kAdt @ x_n1[i]
            + cell.k_mul_b_div_two @ (u_n[i] + u_n1[i]))
        x_out.append(xi)
        y_out.append(cell.C @ xi)
    return jnp.stack(y_out), jnp.stack(x_out)


if __name__ == "__main__":
    key = jax.random.PRNGKey(0)
    k1, k2, k3 = jax.random.split(key, 3)

    batch = 8
    u_n = jax.random.normal(k1, (batch, 1, 1), dtype=jnp.float32)
    u_n1 = jax.random.normal(k2, (batch, 1, 1), dtype=jnp.float32)
    x_n1 = jax.random.normal(k3, (batch, 4, 1), dtype=jnp.float32)

    cell = MoogVCFRFModelCellPallas(r=1.0, f=1000.0, gain=1.0,
                                    sample_rate=44100.0)

    y_n, x_n, u_ret = cell.forward(u_n, x_n1, u_n1)
    jax.block_until_ready((y_n, x_n, u_ret))

    # correctness check against a plain-JAX port of the torch loop
    y_ref, x_ref = _reference_forward(cell, u_n, x_n1, u_n1)
    assert jnp.allclose(y_n, y_ref, atol=1e-5, rtol=1e-5)
    assert jnp.allclose(x_n, x_ref, atol=1e-5, rtol=1e-5)
    assert u_ret is u_n

    print("KERNEL_OK")
</pallas_src>

<mosaic_0001>
module attributes {stable_mosaic.version = 11 : i64} {
  func.func @_moog_cell_kernel(%arg0: memref<4x4xf32, #tpu.memory_space<smem>>, %arg1: memref<4xf32, #tpu.memory_space<smem>>, %arg2: memref<1xf32, #tpu.memory_space<smem>>, %arg3: memref<1x128xf32, #tpu.memory_space<vmem>>, %arg4: memref<1x128xf32, #tpu.memory_space<vmem>>, %arg5: memref<4x128xf32, #tpu.memory_space<vmem>>, %arg6: memref<1x128xf32, #tpu.memory_space<vmem>>, %arg7: memref<4x128xf32, #tpu.memory_space<vmem>>) attributes {dimension_semantics = [], scalar_prefetch = 0 : i64, scratch_operands = 0 : i64, tpu.core_type = #tpu.core_type<tc>} {
    %c0 = arith.constant 0 : index
    %c0_0 = arith.constant 0 : index
    %0 = vector.load %arg5[%c0, %c0_0] : memref<4x128xf32, #tpu.memory_space<vmem>>, vector<4x128xf32>
    %c0_1 = arith.constant 0 : index
    %c0_2 = arith.constant 0 : index
    %1 = vector.load %arg3[%c0_1, %c0_2] : memref<1x128xf32, #tpu.memory_space<vmem>>, vector<1x128xf32>
    %c0_3 = arith.constant 0 : index
    %c0_4 = arith.constant 0 : index
    %2 = vector.load %arg4[%c0_3, %c0_4] : memref<1x128xf32, #tpu.memory_space<vmem>>, vector<1x128xf32>
    %3 = arith.addf %1, %2 : vector<1x128xf32>
    %c0_5 = arith.constant 0 : index
    %4 = memref.load %arg1[%c0_5] : memref<4xf32, #tpu.memory_space<smem>>
    %5 = vector.broadcast %4 : f32 to vector<1x128xf32>
    %6 = arith.mulf %5, %3 : vector<1x128xf32>
    %c0_6 = arith.constant 0 : index
    %c0_7 = arith.constant 0 : index
    %7 = memref.load %arg0[%c0_6, %c0_7] : memref<4x4xf32, #tpu.memory_space<smem>>
    %8 = vector.extract_strided_slice %0 {offsets = [0, 0], sizes = [1, 128], strides = [1, 1]} : vector<4x128xf32> to vector<1x128xf32>
    %9 = vector.broadcast %7 : f32 to vector<1x128xf32>
    %10 = arith.mulf %9, %8 : vector<1x128xf32>
    %11 = arith.addf %6, %10 : vector<1x128xf32>
    %c0_8 = arith.constant 0 : index
    %c1 = arith.constant 1 : index
    %12 = memref.load %arg0[%c0_8, %c1] : memref<4x4xf32, #tpu.memory_space<smem>>
    %13 = vector.extract_strided_slice %0 {offsets = [1, 0], sizes = [1, 128], strides = [1, 1]} : vector<4x128xf32> to vector<1x128xf32>
    %14 = vector.broadcast %12 : f32 to vector<1x128xf32>
    %15 = arith.mulf %14, %13 : vector<1x128xf32>
    %16 = arith.addf %11, %15 : vector<1x128xf32>
    %c0_9 = arith.constant 0 : index
    %c2 = arith.constant 2 : index
    %17 = memref.load %arg0[%c0_9, %c2] : memref<4x4xf32, #tpu.memory_space<smem>>
    %18 = vector.extract_strided_slice %0 {offsets = [2, 0], sizes = [1, 128], strides = [1, 1]} : vector<4x128xf32> to vector<1x128xf32>
    %19 = vector.broadcast %17 : f32 to vector<1x128xf32>
    %20 = arith.mulf %19, %18 : vector<1x128xf32>
    %21 = arith.addf %16, %20 : vector<1x128xf32>
    %c0_10 = arith.constant 0 : index
    %c3 = arith.constant 3 : index
    %22 = memref.load %arg0[%c0_10, %c3] : memref<4x4xf32, #tpu.memory_space<smem>>
    %23 = vector.extract_strided_slice %0 {offsets = [3, 0], sizes = [1, 128], strides = [1, 1]} : vector<4x128xf32> to vector<1x128xf32>
    %24 = vector.broadcast %22 : f32 to vector<1x128xf32>
    %25 = arith.mulf %24, %23 : vector<1x128xf32>
    %26 = arith.addf %21, %25 : vector<1x128xf32>
    %c1_11 = arith.constant 1 : index
    %27 = memref.load %arg1[%c1_11] : memref<4xf32, #tpu.memory_space<smem>>
    %28 = vector.broadcast %27 : f32 to vector<1x128xf32>
    %29 = arith.mulf %28, %3 : vector<1x128xf32>
    %c1_12 = arith.constant 1 : index
    %c0_13 = arith.constant 0 : index
    %30 = memref.load %arg0[%c1_12, %c0_13] : memref<4x4xf32, #tpu.memory_space<smem>>
    %31 = vector.extract_strided_slice %0 {offsets = [0, 0], sizes = [1, 128], strides = [1, 1]} : vector<4x128xf32> to vector<1x128xf32>
    %32 = vector.broadcast %30 : f32 to vector<1x128xf32>
    %33 = arith.mulf %32, %31 : vector<1x128xf32>
    %34 = arith.addf %29, %33 : vector<1x128xf32>
    %c1_14 = arith.constant 1 : index
    %c1_15 = arith.constant 1 : index
    %35 = memref.load %arg0[%c1_14, %c1_15] : memref<4x4xf32, #tpu.memory_space<smem>>
    %36 = vector.extract_strided_slice %0 {offsets = [1, 0], sizes = [1, 128], strides = [1, 1]} : vector<4x128xf32> to vector<1x128xf32>
    %37 = vector.broadcast %35 : f32 to vector<1x128xf32>
    %38 = arith.mulf %37, %36 : vector<1x128xf32>
    %39 = arith.addf %34, %38 : vector<1x128xf32>
    %c1_16 = arith.constant 1 : index
    %c2_17 = arith.constant 2 : index
    %40 = memref.load %arg0[%c1_16, %c2_17] : memref<4x4xf32, #tpu.memory_space<smem>>
    %41 = vector.extract_strided_slice %0 {offsets = [2, 0], sizes = [1, 128], strides = [1, 1]} : vector<4x128xf32> to vector<1x128xf32>
    %42 = vector.broadcast %40 : f32 to vector<1x128xf32>
    %43 = arith.mulf %42, %41 : vector<1x128xf32>
    %44 = arith.addf %39, %43 : vector<1x128xf32>
    %c1_18 = arith.constant 1 : index
    %c3_19 = arith.constant 3 : index
    %45 = memref.load %arg0[%c1_18, %c3_19] : memref<4x4xf32, #tpu.memory_space<smem>>
    %46 = vector.extract_strided_slice %0 {offsets = [3, 0], sizes = [1, 128], strides = [1, 1]} : vector<4x128xf32> to vector<1x128xf32>
    %47 = vector.broadcast %45 : f32 to vector<1x128xf32>
    %48 = arith.mulf %47, %46 : vector<1x128xf32>
    %49 = arith.addf %44, %48 : vector<1x128xf32>
    %c2_20 = arith.constant 2 : index
    %50 = memref.load %arg1[%c2_20] : memref<4xf32, #tpu.memory_space<smem>>
    %51 = vector.broadcast %50 : f32 to vector<1x128xf32>
    %52 = arith.mulf %51, %3 : vector<1x128xf32>
    %c2_21 = arith.constant 2 : index
    %c0_22 = arith.constant 0 : index
    %53 = memref.load %arg0[%c2_21, %c0_22] : memref<4x4xf32, #tpu.memory_space<smem>>
    %54 = vector.extract_strided_slice %0 {offsets = [0, 0], sizes = [1, 128], strides = [1, 1]} : vector<4x128xf32> to vector<1x128xf32>
    %55 = vector.broadcast %53 : f32 to vector<1x128xf32>
    %56 = arith.mulf %55, %54 : vector<1x128xf32>
    %57 = arith.addf %52, %56 : vector<1x128xf32>
    %c2_23 = arith.constant 2 : index
    %c1_24 = arith.constant 1 : index
    %58 = memref.load %arg0[%c2_23, %c1_24] : memref<4x4xf32, #tpu.memory_space<smem>>
    %59 = vector.extract_strided_slice %0 {offsets = [1, 0], sizes = [1, 128], strides = [1, 1]} : vector<4x128xf32> to vector<1x128xf32>
    %60 = vector.broadcast %58 : f32 to vector<1x128xf32>
    %61 = arith.mulf %60, %59 : vector<1x128xf32>
    %62 = arith.addf %57, %61 : vector<1x128xf32>
    %c2_25 = arith.constant 2 : index
    %c2_26 = arith.constant 2 : index
    %63 = memref.load %arg0[%c2_25, %c2_26] : memref<4x4xf32, #tpu.memory_space<smem>>
    %64 = vector.extract_strided_slice %0 {offsets = [2, 0], sizes = [1, 128], strides = [1, 1]} : vector<4x128xf32> to vector<1x128xf32>
    %65 = vector.broadcast %63 : f32 to vector<1x128xf32>
    %66 = arith.mulf %65, %64 : vector<1x128xf32>
    %67 = arith.addf %62, %66 : vector<1x128xf32>
    %c2_27 = arith.constant 2 : index
    %c3_28 = arith.constant 3 : index
    %68 = memref.load %arg0[%c2_27, %c3_28] : memref<4x4xf32, #tpu.memory_space<smem>>
    %69 = vector.extract_strided_slice %0 {offsets = [3, 0], sizes = [1, 128], strides = [1, 1]} : vector<4x128xf32> to vector<1x128xf32>
    %70 = vector.broadcast %68 : f32 to vector<1x128xf32>
    %71 = arith.mulf %70, %69 : vector<1x128xf32>
    %72 = arith.addf %67, %71 : vector<1x128xf32>
    %c3_29 = arith.constant 3 : index
    %73 = memref.load %arg1[%c3_29] : memref<4xf32, #tpu.memory_space<smem>>
    %74 = vector.broadcast %73 : f32 to vector<1x128xf32>
    %75 = arith.mulf %74, %3 : vector<1x128xf32>
    %c3_30 = arith.constant 3 : index
    %c0_31 = arith.constant 0 : index
    %76 = memref.load %arg0[%c3_30, %c0_31] : memref<4x4xf32, #tpu.memory_space<smem>>
    %77 = vector.extract_strided_slice %0 {offsets = [0, 0], sizes = [1, 128], strides = [1, 1]} : vector<4x128xf32> to vector<1x128xf32>
    %78 = vector.broadcast %76 : f32 to vector<1x128xf32>
    %79 = arith.mulf %78, %77 : vector<1x128xf32>
    %80 = arith.addf %75, %79 : vector<1x128xf32>
    %c3_32 = arith.constant 3 : index
    %c1_33 = arith.constant 1 : index
    %81 = memref.load %arg0[%c3_32, %c1_33] : memref<4x4xf32, #tpu.memory_space<smem>>
    %82 = vector.extract_strided_slice %0 {offsets = [1, 0], sizes = [1, 128], strides = [1, 1]} : vector<4x128xf32> to vector<1x128xf32>
    %83 = vector.broadcast %81 : f32 to vector<1x128xf32>
    %84 = arith.mulf %83, %82 : vector<1x128xf32>
    %85 = arith.addf %80, %84 : vector<1x128xf32>
    %c3_34 = arith.constant 3 : index
    %c2_35 = arith.constant 2 : index
    %86 = memref.load %arg0[%c3_34, %c2_35] : memref<4x4xf32, #tpu.memory_space<smem>>
    %87 = vector.extract_strided_slice %0 {offsets = [2, 0], sizes = [1, 128], strides = [1, 1]} : vector<4x128xf32> to vector<1x128xf32>
    %88 = vector.broadcast %86 : f32 to vector<1x128xf32>
    %89 = arith.mulf %88, %87 : vector<1x128xf32>
    %90 = arith.addf %85, %89 : vector<1x128xf32>
    %c3_36 = arith.constant 3 : index
    %c3_37 = arith.constant 3 : index
    %91 = memref.load %arg0[%c3_36, %c3_37] : memref<4x4xf32, #tpu.memory_space<smem>>
    %92 = vector.extract_strided_slice %0 {offsets = [3, 0], sizes = [1, 128], strides = [1, 1]} : vector<4x128xf32> to vector<1x128xf32>
    %93 = vector.broadcast %91 : f32 to vector<1x128xf32>
    %94 = arith.mulf %93, %92 : vector<1x128xf32>
    %95 = arith.addf %90, %94 : vector<1x128xf32>
    %96 = tpu.concatenate %26, %49, %72, %95 in 0 : vector<1x128xf32>, vector<1x128xf32>, vector<1x128xf32>, vector<1x128xf32> -> vector<4x128xf32>
    %c0_38 = arith.constant 0 : index
    %c0_39 = arith.constant 0 : index
    %97 = vector.load %arg7[%c0_38, %c0_39] : memref<4x128xf32, #tpu.memory_space<vmem>>, vector<4x128xf32>
    tpu.vector_store %arg7[%c0_38, %c0_39], %96 {strides = array<i32>} : memref<4x128xf32, #tpu.memory_space<vmem>>, vector<4x128xf32>,
    %c0_40 = arith.constant 0 : index
    %98 = memref.load %arg2[%c0_40] : memref<1xf32, #tpu.memory_space<smem>>
    %99 = vector.broadcast %98 : f32 to vector<1x128xf32>
    %100 = arith.mulf %99, %95 : vector<1x128xf32>
    %c0_41 = arith.constant 0 : index
    %c0_42 = arith.constant 0 : index
    %101 = vector.load %arg6[%c0_41, %c0_42] : memref<1x128xf32, #tpu.memory_space<vmem>>, vector<1x128xf32>
    tpu.vector_store %arg6[%c0_41, %c0_42], %100 {strides = array<i32>} : memref<1x128xf32, #tpu.memory_space<vmem>>, vector<1x128xf32>,
    return
  }
}

</mosaic_0001>

<bundles_post_ra>
// kernel: tpu_custom_call.1
= control target key start
LH: loop header
LB: loop body
LE: loop exit
PB: predicated region body
PF: predicated region fallthrough
CT: control target
= control target key end

     0   :  { %14 = vsyncpa [#allocation5], 0  ;;  %s689_s0 = inlined_call_operand.hbm [shape: f32[4,4], index: 0, kind: input, shape index: {}]   ;;  %s690_s1 = inlined_call_operand.vmem [shape: f32[4], index: 1, kind: input, shape index: {}]   ;;  %s691_s2 = inlined_call_operand.<no memory space> [shape: f32[1], index: 2, kind: input, shape index: {}]   ;;  %s692_s3 = inlined_call_operand.vmem [shape: f32[1,128], index: 3, kind: input, shape index: {}]   ;;  %s693_s4 = inlined_call_operand.vmem [shape: f32[1,128], index: 4, kind: input, shape index: {}]   ;;  %s694_s5 = inlined_call_operand.vmem [shape: f32[4,128], index: 5, kind: input, shape index: {}]   ;;  %s695_s6 = inlined_call_operand.hbm [shape: f32[1,128], index: 6, kind: output, shape index: {0}]   ;;  %s696_s7 = inlined_call_operand.hbm [shape: f32[4,128], index: 7, kind: output, shape index: {1}]  }
   0x1   :  { %15 = vsyncpa [#allocation6], 0 }
   0x2   :  { %16 = vsyncpa [#allocation4], 0 }
   0x3   :  { %17 = vsyncpa [#allocation10], 0  ;;  %s32_s26 = sshll.u32 %s690_s1, 4  ;;  %s421_s29 = scalar_lea.hbm %s689_s0, 64  ;;  %s33_s26 = int_to_ptr.vmem [resolvable:$true] %s32_s26 }
   0x4   :  { %p422_p0 = scmp.ne.s32.totalorder %s689_s0, %s421_s29  ;;  %p425_p1 = scmp.lt.u32.totalorder %s421_s29, %s689_s0 }
   0x6   :  { %p427_p2 = pnand %p425_p1, %p422_p0 }
   0x8   :  { %430 = shalt.err (!%p427_p2)
}
   0x9   :  { %s495_s11 = smov [#allocation3]   ;;  %s431_s1 = scalar_lea.vmem %s33_s26, 16 }
   0xa   :  { %25 = dma.hbm_to_smem %s689_s0, 64, %s495_s11, [#allocation5]  }
   0xb   :  { %p432_p3 = scmp.ne.s32.totalorder %s33_s26, %s431_s1  ;;  %p436_p4 = scmp.lt.s32.totalorder %s33_s26, %s33_s26 }
   0xc   :  { %p437_p5 = scmp.lt.s32.totalorder %s431_s1, %s431_s1 }
   0xe   :  { %p438_p6 = por %p437_p5, %p436_p4 }
  0x10   :  { %p439_p7 = pnand %p438_p6, %p432_p3 }
  0x12   :  { %442 = shalt.err (!%p439_p7)
}
  0x13   :  { %s496_s14 = smov [#allocation7]  }
  0x14   :  { %35 = dma.vmem_to_smem %s33_s26, 16, %s496_s14, [#allocation6]  }
  0x15   :  { %487 = dma.done.wait [#allocation5], 64  }
  0x16   :  { %488 = vsyncadd [#allocation5], 4294967232 }
  0x17   :  { %489 = dma.done.wait [#allocation6], 16  }
  0x18   :  { %490 = vsyncadd [#allocation6], 4294967280 }
  0x19   :  { %50 = sfence }
  0x1a   :  { %v69_v0 = vlaneseq  ;;  %s55_s15 = sld [smem:[#allocation7]]  ;;  %v52_v1 = vld [vmem:[%s692_s3] sm:$0x1]  ;;  %s398_s18 = sld [smem:[#allocation3 + $0x1]]  ;;  %v497_v2 = vmov 1966171168  }
  0x1b   :  { %s58_s16 = sld [smem:[#allocation3]]  ;;  %v67_v3 = vunpack.c.l.s4 %v497_v2  ;;  %s399_s19 = sld [smem:[#allocation3 + $0x2]]  ;;  %v53_v4 = vld [vmem:[%s693_s4] sm:$0x1]  ;;  %vm357_vm0 = vcmask 1040384   ;;  %vm359_vm1 = vcmask 1041408  }
  0x1c   :  { %s400_s22 = sld [smem:[#allocation3 + $0x3]]  ;;  %s401_s23 = sld [smem:[#allocation7 + $0x1]]  ;;  %v70_v6 = vshrl.u32 %v69_v0, 7  ;;  %v565_v7 = vadd.f32 %v53_v4, %v52_v1  ;;  %v572_v10 = vld [vmem:[%s694_s5] sm:$0xf]  ;;  %vm361_vm2 = vcmask 1042432  }
  0x1d   :  { %v68_v5 = vunpack.c.0.s8 %v67_v3  ;;  %s402_s24 = sld [smem:[#allocation3 + $0x80]]  ;;  %s403_s25 = sld [smem:[#allocation3 + $0x81]] }
  0x1e   :  { %s561_s26 = sld [smem:[#allocation3 + $0x82]]  ;;  %s563_s27 = sld [smem:[#allocation3 + $0x83]]  ;;  %v605_v36 = vsub.s32 0, %v70_v6 }
  0x1f   :  { %s567_s3 = sld [smem:[#allocation7 + $0x2]]  ;;  %v575_v13 = vsub.s32 %v68_v5, %v70_v6  ;;  %s577_s4 = sld [smem:[#allocation3 + $0x100]] }
  0x20   :  { %v56_v8 = vstv %s55_s15  ;;  %v63_v12 = vstv %s398_s18  ;;  %s581_s30 = sld [smem:[#allocation3 + $0x101]]  ;;  %s589_s5 = sld [smem:[#allocation3 + $0x102]] }
  0x21   :  { %v59_v9 = vstv %s58_s16  ;;  %v57_v11 = vmul.f32 %v56_v8, %v565_v7  ;;  %v84_v14 = vstv %s399_s19  ;;  %v64_v15 = vmul.f32 %v63_v12, %v572_v10  ;;  %s595_s8 = sld [smem:[#allocation3 + $0x103]]  ;;  %s600_s10 = sld [smem:[#allocation3 + $0x180]] }
  0x22   :  { %v85_v16 = vmul.f32 %v84_v14, %v572_v10  ;;  %v105_v17 = vstv %s400_s22  ;;  %v127_v18 = vstv %s401_s23  ;;  %v60_v19 = vmul.f32 %v59_v9, %v572_v10  ;;  %s598_s9 = sld [smem:[#allocation7 + $0x3]]  ;;  %s609_s11 = sld [smem:[#allocation3 + $0x181]] }
  0x23   :  { %v106_v20 = vmul.f32 %v105_v17, %v572_v10  ;;  %v128_v21 = vmul.f32 %v127_v18, %v565_v7  ;;  %v130_v22 = vstv %s402_s24  ;;  %v72_v23 = vrot.slane %v64_v15, %v575_v13  ;;  %s617_s12 = sld [smem:[#allocation3 + $0x182]]  ;;  %s619_s13 = sld [smem:[#allocation3 + $0x183]] }
  0x24   :  { %v93_v24 = vrot.slane %v85_v16, %v575_v13  ;;  %v131_v25 = vmul.f32 %v130_v22, %v572_v10  ;;  %v134_v26 = vstv %s403_s25  ;;  %v155_v29 = vstv %s561_s26  ;;  %s498_s15 = smov [#allocation8]   ;;  %s499_s17 = smov [#allocation9]  }
  0x25   :  { %v114_v27 = vrot.slane %v106_v20, %v575_v13  ;;  %v135_v28 = vmul.f32 %v134_v26, %v572_v10  ;;  %v176_v30 = vstv %s563_s27  ;;  %v73_v31 = vcombine.high %v72_v23, %v72_v23  ;;  %s374_s16 = sshll.u32 %s498_s15, 4  ;;  %s384_s0 = sshll.u32 %s499_s17, 4  ;;  %s375_s16 = int_to_ptr.vmem [resolvable:$true] %s374_s16  ;;  %s658_s0 = int_to_ptr.vmem [resolvable:$true] %s384_s0 }
  0x26   :  { %v156_v32 = vmul.f32 %v155_v29, %v572_v10  ;;  %v177_v34 = vmul.f32 %v176_v30, %v572_v10  ;;  %v198_v35 = vstv %s567_s3  ;;  %v61_v37 = vadd.f32 %v60_v19, %v57_v11  ;;  %s443_s18 = scalar_lea.vmem %s375_s16, 16  ;;  %s447_s19 = scalar_lea.vmem %s375_s16, 32 }
  0x27   :  { %v143_v33 = vrot.slane %v135_v28, %v575_v13  ;;  %v100_v38 = vrot.slane %v93_v24, %v575_v13  ;;  %v115_v39 = vcombine.high %v114_v27, %v114_v27  ;;  %v132_v41 = vadd.f32 %v131_v25, %v128_v21  ;;  %p444_p8 = scmp.ne.s32.totalorder %s375_s16, %s443_s18  ;;  %p448_p9 = scmp.lt.s32.totalorder %s375_s16, %s375_s16 }
  0x28   :  { %v164_v40 = vrot.slane %v156_v32, %v575_v13  ;;  %v185_v43 = vrot.slane %v177_v34, %v575_v13  ;;  %v201_v44 = vstv %s577_s4  ;;  %v80_v45 = vrot.slane %v73_v31, %v575_v13  ;;  %p449_p10 = scmp.lt.s32.totalorder %s447_s19, %s443_s18 }
  0x29   :  { %v144_v42 = vcombine.high %v143_v33, %v143_v33  ;;  %v199_v47 = vmul.f32 %v198_v35, %v565_v7  ;;  %v205_v48 = vstv %s581_s30  ;;  %v202_v51 = vmul.f32 %v201_v44, %v572_v10 }
  0x2a   :  { %v171_v46 = vrot.slane %v164_v40, %v575_v13  ;;  %v186_v50 = vcombine.high %v185_v43, %v185_v43  ;;  %v206_v52 = vmul.f32 %v205_v48, %v572_v10  ;;  %v101_v53 = vcombine.high %v100_v38, %v100_v38  ;;  %p450_p11 = por %p449_p10, %p448_p9 }
  0x2b   :  { %v151_v49 = vrot.slane %v144_v42, %v575_v13  ;;  %v122_v54 = vrot.slane %v115_v39, %v575_v13  ;;  %v226_v56 = vstv %s589_s5  ;;  %v82_v61 = vadd.f32 %v80_v45, %v61_v37 }
  0x2c   :  { %v172_v55 = vcombine.high %v171_v46, %v171_v46  ;;  %v193_v58 = vrot.slane %v186_v50, %v575_v13  ;;  %v214_v59 = vrot.slane %v206_v52, %v575_v13  ;;  %v227_v60 = vmul.f32 %v226_v56, %v572_v10  ;;  %p451_p12 = pnand %p450_p11, %p444_p8 }
  0x2d   :  { %v153_v57 = vadd.f32 %v151_v49, %v132_v41  ;;  %v247_v62 = vstv %s595_s8  ;;  %v269_v63 = vstv %s598_s9  ;;  %v272_v0 = vstv %s600_s10 }
  0x2e   :  { %v203_v2 = vadd.f32 %v202_v51, %v199_v47  ;;  %v215_v3 = vcombine.high %v214_v59, %v214_v59  ;;  %v235_v4 = vrot.slane %v227_v60, %v575_v13  ;;  %v194_v5 = vcombine.high %v193_v58, %v193_v58 }
  0x2f   :  { %v174_v1 = vadd.f32 %v172_v55, %v153_v57  ;;  %v248_v6 = vmul.f32 %v247_v62, %v572_v10  ;;  %v270_v8 = vmul.f32 %v269_v63, %v565_v7  ;;  %v276_v9 = vstv %s609_s11 }
  0x30   :  { %v222_v11 = vrot.slane %v215_v3, %v575_v13  ;;  %v242_v12 = vrot.slane %v235_v4, %v575_v13  ;;  %v273_v14 = vmul.f32 %v272_v0, %v572_v10  ;;  %v277_v15 = vmul.f32 %v276_v9, %v572_v10 }
  0x31   :  { %v123_v16 = vcombine.high %v122_v54, %v122_v54  ;;  %v256_v17 = vrot.slane %v248_v6, %v575_v13  ;;  %v297_v18 = vstv %s617_s12  ;;  %v318_v19 = vstv %s619_s13 }
  0x32   :  { %v224_v20 = vadd.f32 %v222_v11, %v203_v2  ;;  %v243_v21 = vcombine.high %v242_v12, %v242_v12  ;;  %v285_v22 = vrot.slane %v277_v15, %v575_v13  ;;  %v298_v7 = vmul.f32 %v297_v18, %v572_v10 }
  0x33   :  { %v103_v23 = vadd.f32 %v101_v53, %v82_v61  ;;  %v196_v24 = vadd.f32 %v194_v5, %v174_v1  ;;  %v257_v25 = vcombine.high %v256_v17, %v256_v17  ;;  %v319_v26 = vmul.f32 %v318_v19, %v572_v10 }
  0x34   :  { %v274_v27 = vadd.f32 %v273_v14, %v270_v8  ;;  %v286_v28 = vcombine.high %v285_v22, %v285_v22  ;;  %v306_v29 = vrot.slane %v298_v7, %v575_v13  ;;  %v245_v30 = vadd.f32 %v243_v21, %v224_v20 }
  0x35   :  { %v264_v31 = vrot.slane %v257_v25, %v575_v13  ;;  %v327_v32 = vrot.slane %v319_v26, %v575_v13  ;;  %v125_v35 = vadd.f32 %v123_v16, %v103_v23  ;;  %v343_v39 = vrot.slane %v196_v24, %v605_v36 }
  0x36   :  { %v293_v33 = vrot.slane %v286_v28, %v575_v13  ;;  %v313_v34 = vrot.slane %v306_v29, %v575_v13  ;;  %v365_v47 = vstv %s691_s2 }
  0x37   :  { %v265_v37 = vcombine.high %v264_v31, %v264_v31  ;;  %v328_v38 = vcombine.high %v327_v32, %v327_v32  ;;  %v358_v46 = vsel %vm357_vm0, %v125_v35, %v343_v39 }
  0x38   :  { %v295_v40 = vadd.f32 %v293_v33, %v274_v27  ;;  %v314_v10 = vcombine.high %v313_v34, %v313_v34 }
  0x39   :  { %v267_v41 = vadd.f32 %v265_v37, %v245_v30  ;;  %v335_v42 = vrot.slane %v328_v38, %v575_v13 }
  0x3a   :  { %v316_v43 = vadd.f32 %v314_v10, %v295_v40 }
  0x3b   :  { %v336_v44 = vcombine.high %v335_v42, %v335_v42  ;;  %v349_v45 = vrot.slane %v267_v41, %v605_v36 }
  0x3d   :  { %v338_v48 = vadd.f32 %v336_v44, %v316_v43  ;;  %v360_v49 = vsel %vm359_vm1, %v358_v46, %v349_v45 }
  0x3f   :  { %v355_v50 = vrot.slane %v338_v48, %v605_v36  ;;  %v366_v13 = vmul.f32 %v365_v47, %v338_v48 }
  0x41   :  { %v362_v51 = vsel %vm361_vm2, %v360_v49, %v355_v50  ;;  %367 = vst [vmem:[#allocation8] sm:$0x1] %v366_v13 }
  0x42   :  { %363 = vst [vmem:[#allocation9] sm:$0xf] %v362_v51 }
  0x43   :  { %454 = shalt.err (!%p451_p12)
}
  0x44   :  { %s455_s21 = scalar_lea.hbm %s695_s6, 16 }
  0x45   :  { %p456_p13 = scmp.ne.s32.totalorder %s695_s6, %s455_s21  ;;  %p459_p0 = scmp.lt.u32.totalorder %s455_s21, %s695_s6 }
  0x47   :  { %p461_p1 = pnand %p459_p0, %p456_p13 }
  0x49   :  { %464 = shalt.err (!%p461_p1)
}
  0x4a   :  { %377 = dma.vmem_to_hbm [thread:$0]  %s375_s16, 16, %s695_s6, [#allocation4]  }
  0x4b   :  { %s465_s3 = scalar_lea.vmem %s658_s0, 64  ;;  %p470_p3 = scmp.lt.s32.totalorder %s658_s0, %s658_s0 }
  0x4c   :  { %p466_p2 = scmp.ne.s32.totalorder %s658_s0, %s465_s3  ;;  %p471_p4 = scmp.lt.s32.totalorder %s465_s3, %s465_s3 }
  0x4e   :  { %p472_p5 = por %p471_p4, %p470_p3 }
  0x50   :  { %p473_p6 = pnand %p472_p5, %p466_p2 }
  0x52   :  { %476 = shalt.err (!%p473_p6)
}
  0x53   :  { %s477_s4 = scalar_lea.hbm %s696_s7, 64 }
  0x54   :  { %p478_p7 = scmp.ne.s32.totalorder %s696_s7, %s477_s4  ;;  %p481_p8 = scmp.lt.u32.totalorder %s477_s4, %s696_s7 }
  0x56   :  { %p483_p9 = pnand %p481_p8, %p478_p7 }
  0x58   :  { %486 = shalt.err (!%p483_p9)
}
  0x59   :  { %387 = dma.vmem_to_hbm [thread:$0]  %s658_s0, 64, %s696_s7, [#allocation10]  }
  0x5a   :  { %491 = dma.done.wait [#allocation4], 16  }
  0x5b   :  { %492 = vsyncadd [#allocation4], 4294967280 }
  0x5c   :  { %493 = dma.done.wait [#allocation10], 64  }
  0x5d   :  { %494 = vsyncadd [#allocation10], 4294967232 }
  0x5e   :  { %394 = vsyncpa [#allocation4], 1 }
  0x5f   :  { %395 = vsyncpa [#allocation10], 1 }
  0x60   :  { %396 = vsyncpa [#allocation5], 1 }
  0x61   :  { %397 = vsyncpa [#allocation6], 1 }

</bundles_post_ra>
